<compile_context>
chip_gen: v7x
topology: tpu7x:2x2x1
jax: 0.10.0
libtpu: 0.0.40
codegen_flags: <defaults>
</compile_context>

<pallas_src>
import functools

import jax
import jax.numpy as jnp
from jax.experimental import pallas as pl
from jax.experimental.pallas import tpu as pltpu


def _round_up(x, m):
    return ((x + m - 1) // m) * m


def _nll_ls_kernel(logp_ref, tgt_ref, out_ref, acc_ref, *,
                   positive, negative, n_total, c_total,
                   tile_n, tile_c, n_row_tiles, n_cls_tiles,
                   row_edge, col_edge):
    i = pl.program_id(0)          # row-tile index   ("parallel")
    j = pl.program_id(1)          # class-tile index ("arbitrary" reduction)

    lane_ids = jax.lax.broadcasted_iota(jnp.int32, (1, tile_c), 1)

    def row_contrib(mask_rows, mask_cols):
        # Per-row positive-signed contribution of this tile, shape (tile_n, 1).
        logp = logp_ref[...].astype(jnp.float32)
        if mask_cols:                                   # edge tiles only
            cols_left = c_total - j * tile_c
            logp = jnp.where(lane_ids < cols_left, logp, 0.0)
        if mask_rows:                                   # edge tiles only
            rows_left = n_total - i * tile_n
            row_ids = jax.lax.broadcasted_iota(jnp.int32, (tile_n, 1), 0)
            logp = jnp.where(row_ids < rows_left, logp, 0.0)

        tgt = tgt_ref[...]                              # (tile_n, 1) int32
        if n_cls_tiles > 1:
            tgt = tgt - j * tile_c                      # local class index
        sel = jnp.where(lane_ids == tgt, logp, 0.0)

        row_all = jnp.sum(logp, axis=-1, keepdims=True)   # (tile_n, 1)
        row_tgt = jnp.sum(sel, axis=-1, keepdims=True)    # (tile_n, 1)
        return (jnp.float32(negative) * row_all
                + jnp.float32(positive - negative) * row_tgt)

    def emit(contrib):
        if n_cls_tiles == 1:
            # Single class tile: one scalar reduce + SMEM store per row tile.
            out_ref[0, 0] = -jnp.sum(contrib)
        else:
            # Accumulate per-row partials in VMEM across the class loop; only
            # cross the vector->scalar/SMEM boundary on the last class tile.
            @pl.when(j == 0)
            def _():
                acc_ref[...] = jnp.zeros_like(acc_ref)

            acc_ref[...] = acc_ref[...] + contrib

            @pl.when(j == n_cls_tiles - 1)
            def _():
                out_ref[0, 0] = -jnp.sum(acc_ref[...])

    if not row_edge and not col_edge:
        emit(row_contrib(False, False))                 # no masks anywhere
    else:
        conds = []
        if row_edge:
            conds.append(i == n_row_tiles - 1)
        if col_edge:
            conds.append(j == n_cls_tiles - 1)
        is_edge = conds[0] if len(conds) == 1 else jnp.logical_or(*conds)

        @pl.when(is_edge)
        def _():
            emit(row_contrib(row_edge, col_edge))       # masked slow path

        @pl.when(jnp.logical_not(is_edge))
        def _():
            emit(row_contrib(False, False))             # mask-free fast path


def nll_loss_label_smooth(log_softmax, target, num_classes, label_smoothing=0.1):
    """log_softmax: (N, C) float32/bf16, target: (N,) int -> scalar f32 loss."""
    negative = label_smoothing / (num_classes - 1)
    positive = 1.0 - label_smoothing

    n, c = log_softmax.shape
    tgt2d = target.astype(jnp.int32).reshape(n, 1)

    itemsize = jnp.dtype(log_softmax.dtype).itemsize
    row_align = {4: 8, 2: 16, 1: 32}.get(itemsize, 8)   # sublane packing per dtype

    # ---- class tiling ------------------------------------------------------
    # Single full-width class tile for modest C (block == full dim is legal
    # even when C is not a multiple of 128); otherwise lane-dense 2048 tiles.
    # TODO(synk): for C < 128, fold several rows into the lane axis in the
    # wrapper (lane-dense layout) to recover full vreg width.
    tile_c = c if c <= 4096 else 2048
    n_cls_tiles = pl.cdiv(c, tile_c)
    col_edge = (c % tile_c) != 0

    # ---- generation-aware VMEM budget ---------------------------------------
    try:
        vmem_cap = getattr(pltpu.get_tpu_info(), "vmem_capacity_bytes",
                           64 * 1024 * 1024)
    except Exception:                                    # conservative fallback
        vmem_cap = 64 * 1024 * 1024
    if vmem_cap >= 100 * 1024 * 1024:     # v5e / v6e: 128 MiB physical VMEM
        per_buf_budget = 16 * 1024 * 1024
        vmem_limit = 80 * 1024 * 1024
    else:                                 # v7x: 64 MiB physical VMEM
        per_buf_budget = 8 * 1024 * 1024
        vmem_limit = 44 * 1024 * 1024

    # Bytes one pipeline buffer costs per row: logp row + target row padded to
    # 128 lanes (512 B) + per-row f32 accumulator when the class axis is tiled.
    row_cost = tile_c * itemsize + 512 + (512 if n_cls_tiles > 1 else 0)
    tile_n = max(row_align, (per_buf_budget // row_cost) // row_align * row_align)
    tile_n = min(tile_n, _round_up(n, row_align))
    # Keep >= 2 row tiles so the "parallel" axis can shard across TensorCores
    # (v7x megacore); harmless on single-core v5e/v6e.
    if n >= 2 * row_align:
        tile_n = min(tile_n, _round_up(pl.cdiv(n, 2), row_align))

    n_row_tiles = pl.cdiv(n, tile_n)
    row_edge = (n % tile_n) != 0

    acc_rows = tile_n if n_cls_tiles > 1 else 8          # dummy when unused

    kernel = functools.partial(
        _nll_ls_kernel,
        positive=positive, negative=negative, n_total=n, c_total=c,
        tile_n=tile_n, tile_c=tile_c,
        n_row_tiles=n_row_tiles, n_cls_tiles=n_cls_tiles,
        row_edge=row_edge, col_edge=col_edge)

    partials = pl.pallas_call(
        kernel,
        out_shape=jax.ShapeDtypeStruct((n_row_tiles, 1), jnp.float32),
        grid=(n_row_tiles, n_cls_tiles),
        in_specs=[
            pl.BlockSpec((tile_n, tile_c), lambda i, j: (i, j)),   # logp stream
            pl.BlockSpec((tile_n, 1), lambda i, j: (i, 0)),        # targets
        ],
        out_specs=pl.BlockSpec((1, 1), lambda i, j: (i, 0),
                               memory_space=pltpu.SMEM),           # per-tile partial
        scratch_shapes=[pltpu.VMEM((acc_rows, 1), jnp.float32)],
        compiler_params=pltpu.CompilerParams(
            dimension_semantics=("parallel", "arbitrary"),
            vmem_limit_bytes=vmem_limit),
    )(log_softmax, tgt2d)

    # Tiny final reduction + mean over the *global* batch size in the wrapper.
    return jnp.sum(partials) / jnp.float32(n)


def _reference(log_softmax, target, num_classes, label_smoothing=0.1):
    negative = label_smoothing / (num_classes - 1)
    positive = 1.0 - label_smoothing
    lp = log_softmax.astype(jnp.float32)
    onehot = jax.nn.one_hot(target, num_classes, dtype=jnp.float32)
    true_dist = onehot * positive + (1.0 - onehot) * negative
    return jnp.mean(jnp.sum(-true_dist * lp, axis=1))


if __name__ == "__main__":
    key = jax.random.PRNGKey(0)
    k1, k2, k3, k4 = jax.random.split(key, 4)

    # --- small case matching the module's expected use (batch=8, classes=32)
    N, C = 8, 32
    logits = jax.random.normal(k1, (N, C), dtype=jnp.float32)
    log_softmax = jax.nn.log_softmax(logits, axis=1)
    target = jax.random.randint(k2, (N,), 0, C, dtype=jnp.int32)

    loss = nll_loss_label_smooth(log_softmax, target, num_classes=C,
                                 label_smoothing=0.1)
    loss = jax.block_until_ready(loss)
    ref = _reference(log_softmax, target, C, 0.1)
    assert jnp.allclose(loss, ref, atol=1e-5, rtol=1e-5), (loss, ref)

    # --- larger bf16 case exercising multiple row tiles, edge masking, and
    #     the interior-fast-path / edge-slow-path dispatch.
    N2, C2 = 1037, 160
    logits2 = jax.random.normal(k3, (N2, C2), dtype=jnp.float32)
    log_softmax2 = jax.nn.log_softmax(logits2, axis=1).astype(jnp.bfloat16)
    target2 = jax.random.randint(k4, (N2,), 0, C2, dtype=jnp.int32)

    loss2 = nll_loss_label_smooth(log_softmax2, target2, num_classes=C2,
                                  label_smoothing=0.1)
    loss2 = jax.block_until_ready(loss2)
    ref2 = _reference(log_softmax2, target2, C2, 0.1)
    assert jnp.allclose(loss2, ref2, atol=1e-3, rtol=1e-3), (loss2, ref2)

    print("KERNEL_OK")
</pallas_src>

<mosaic_0001>
module attributes {stable_mosaic.version = 11 : i64} {
  func.func @_nll_ls_kernel(%arg0: i32, %arg1: i32, %arg2: memref<8x32xf32, #tpu.memory_space<vmem>>, %arg3: memref<8x1xi32, #tpu.memory_space<vmem>>, %arg4: memref<1x1xf32, #tpu.memory_space<smem>>, %arg5: memref<8x1xf32, #tpu.memory_space<vmem>>) attributes {dimension_semantics = [#tpu.dimension_semantics<parallel>, #tpu.dimension_semantics<arbitrary>], iteration_bounds = array<i64: 1, 1>, scalar_prefetch = 0 : i64, scratch_operands = 1 : i64, tpu.core_type = #tpu.core_type<tc>, window_params = [{transform_indices = @transform_0, window_bounds = array<i64: 8, 32>}, {transform_indices = @transform_1, window_bounds = array<i64: 8, 1>}, {transform_indices = @transform_2, window_bounds = array<i64: 1, 1>}]} {
    %0 = tpu.iota {dimensions = array<i32: 1>} : vector<1x32xi32>
    %c0 = arith.constant 0 : index
    %c0_0 = arith.constant 0 : index
    %1 = vector.load %arg2[%c0, %c0_0] : memref<8x32xf32, #tpu.memory_space<vmem>>, vector<8x32xf32>
    %c0_1 = arith.constant 0 : index
    %c0_2 = arith.constant 0 : index
    %2 = vector.load %arg3[%c0_1, %c0_2] : memref<8x1xi32, #tpu.memory_space<vmem>>, vector<8x1xi32>
    %3 = vector.broadcast %0 : vector<1x32xi32> to vector<8x32xi32>
    %4 = vector.broadcast %2 : vector<8x1xi32> to vector<8x32xi32>
    %5 = arith.cmpi eq, %3, %4 : vector<8x32xi32>
    %cst = arith.constant 0.000000e+00 : f32
    %6 = vector.broadcast %cst : f32 to vector<8x32xf32>
    %7 = arith.select %5, %1, %6 : vector<8x32xi1>, vector<8x32xf32>
    %cst_3 = arith.constant dense<0.000000e+00> : vector<8xf32>
    %8 = vector.multi_reduction <add>, %1, %cst_3 [1] : vector<8x32xf32> to vector<8xf32>
    %9 = vector.shape_cast %8 : vector<8xf32> to vector<8x1xf32>
    %cst_4 = arith.constant dense<0.000000e+00> : vector<8xf32>
    %10 = vector.multi_reduction <add>, %7, %cst_4 [1] : vector<8x32xf32> to vector<8xf32>
    %11 = vector.shape_cast %10 : vector<8xf32> to vector<8x1xf32>
    %cst_5 = arith.constant 0.0032258064 : f32
    %12 = vector.broadcast %cst_5 : f32 to vector<8x1xf32>
    %13 = arith.mulf %12, %9 : vector<8x1xf32>
    %cst_6 = arith.constant 0.896774172 : f32
    %14 = vector.broadcast %cst_6 : f32 to vector<8x1xf32>
    %15 = arith.mulf %14, %11 : vector<8x1xf32>
    %16 = arith.addf %13, %15 : vector<8x1xf32>
    %17 = vector.shape_cast %16 : vector<8x1xf32> to vector<1x8x1xf32>
    %cst_7 = arith.constant dense<0.000000e+00> : vector<1xf32>
    %18 = vector.multi_reduction <add>, %17, %cst_7 [1, 2] : vector<1x8x1xf32> to vector<1xf32>
    %19 = vector.shape_cast %18 : vector<1xf32> to vector<1x1x1xf32>
    %20 = vector.extract %19[0, 0, 0] : f32 from vector<1x1x1xf32>
    %cst_8 = arith.constant 0.000000e+00 : f32
    %21 = arith.subf %cst_8, %20 : f32
    %c0_9 = arith.constant 0 : index
    %c0_10 = arith.constant 0 : index
    %22 = memref.load %arg4[%c0_9, %c0_10] : memref<1x1xf32, #tpu.memory_space<smem>>
    memref.store %21, %arg4[%c0_9, %c0_10] : memref<1x1xf32, #tpu.memory_space<smem>>
    return
  }
  func.func @transform_0(%arg0: i32, %arg1: i32) -> (i32, i32) {
    %c0_i32 = arith.constant 0 : i32
    return %arg0, %arg1 : i32, i32
  }
  func.func @transform_1(%arg0: i32, %arg1: i32) -> (i32, i32) {
    %c0_i32 = arith.constant 0 : i32
    %c0_i32_0 = arith.constant 0 : i32
    return %arg0, %c0_i32 : i32, i32
  }
  func.func @transform_2(%arg0: i32, %arg1: i32) -> (i32, i32) {
    %c0_i32 = arith.constant 0 : i32
    %c0_i32_0 = arith.constant 0 : i32
    return %arg0, %c0_i32 : i32, i32
  }
}

</mosaic_0001>

<bundles_post_ra>
// kernel: tpu_custom_call.1
= control target key start
LH: loop header
LB: loop body
LE: loop exit
PB: predicated region body
PF: predicated region fallthrough
CT: control target
= control target key end

     0   :  { %s110_s0 = inlined_call_operand.vmem [shape: f32[8,32], index: 0, kind: input, shape index: {}]   ;;  %s111_s1 = inlined_call_operand.vmem [shape: s32[8,1], index: 1, kind: input, shape index: {}]   ;;  %s112_s2 = inlined_call_operand.hbm [shape: f32[1,1], index: 2, kind: output, shape index: {}]  }
   0x1   :  { %v15_v0 = vld [vmem:[%s111_s1] sm:$0xff] }
   0x2   :  { %7 = vsyncpa [#allocation4], 0  ;;  %v75_v1 = vmov 0   ;;  %v14_v2 = vld [vmem:[%s110_s0] sm:$0xff]  ;;  %vm21_vm0 = vcmask 261120   ;;  %v12_v4 = vlaneseq  ;;  %vm31_vm2 = vcmask 7168  }
   0x3   :  { %62 = vset.pattern.permute.xlu0 %v75_v1  ;;  %v22_v3 = vsel %vm21_vm0, %v14_v2, 0.0  ;;  %s63_s15 = scalar_lea.hbm %s112_s2, 16 }
   0x4   :  { %17 = vperm.xlu0 %62, %v15_v0   ;;  %v13_v5 = vand.u32 127, %v12_v4  ;;  %p64_p0 = scmp.ne.s32.totalorder %s112_s2, %s63_s15  ;;  %p67_p1 = scmp.lt.u32.totalorder %s63_s15, %s112_s2 }
   0x6   :  { %p69_p2 = pnand %p67_p1, %p64_p0 }
  0x23   :  { %23 = vadd.xlane.f32.xlu0 %v22_v3 }
  0x83   :  { %v18_v6 = vpop.permute.xlu0 %17 }
  0x84   :  { %vm19_vm1 = vcmp.eq.s32.totalorder %v13_v5, %v18_v6 }
  0x85   :  { %v20_v7 = vsel %vm19_vm1, %v14_v2, 0.0 }
  0x86   :  { %v25_v8 = vsel %vm21_vm0, %v20_v7, 0.0 }
  0x87   :  { %26 = vadd.xlane.f32.xlu1 %v25_v8 }
  0xb0   :  { %v24_v9 = vpop.xlane.xlu0 %23 }
  0xb1   :  { %v28_v10 = vmul.f32 0.0032258064, %v24_v9 }
 0x114   :  { %v27_v11 = vpop.xlane.xlu1 %26 }
 0x115   :  { %v29_v12 = vmul.f32 0.8967742, %v27_v11 }
 0x117   :  { %v30_v13 = vadd.f32 %v29_v12, %v28_v10 }
 0x119   :  { %v32_v14 = vsel %vm31_vm2, %v30_v13, 0.0 }
 0x11a   :  { %33 = vadd.xlane.f32.xlu1 %v32_v14 }
 0x1a7   :  { %v34_v15 = vpop.xlane.xlu1 %33 }
 0x1a8   :  { %v35_v16 = vrot.slane %v34_v15, 4 }
 0x1aa   :  { %v36_v17 = vadd.f32 %v35_v16, %v34_v15 }
 0x1ac   :  { %v37_v18 = vrot.slane %v36_v17, 2 }
 0x1ae   :  { %v38_v19 = vadd.f32 %v37_v18, %v36_v17 }
 0x1b0   :  { %v39_v20 = vrot.slane %v38_v19, 1 }
 0x1b2   :  { %v40_v21 = vadd.f32 %v39_v20, %v38_v19 }
 0x1b4   :  { %58 = vpush %v40_v21 }
 0x1e5   :  { %s59_s0 = spop %58 }
 0x1e6   :  { %s42_s1 = ssub.f32 0.0, %s59_s0 }
 0x1e8   :  { %44 = sst [smem:[#allocation3]] %s42_s1 }
 0x1e9   :  { %72 = shalt.err (!%p69_p2)
}
 0x1ea   :  { %s76_s20 = smov [#allocation3]  }
 0x1eb   :  { %52 = dma.smem_to_hbm %s76_s20, 16, %s112_s2, [#allocation4]  }
 0x1ec   :  { %73 = dma.done.wait [#allocation4], 16  }
 0x1ed   :  { %74 = vsyncadd [#allocation4], 4294967280 }
 0x1ee   :  { %56 = sfence }
 0x1ef   :  { %57 = vsyncpa [#allocation4], 1 }

</bundles_post_ra>
